<compile_context>
chip_gen: v6e
topology: v6e:2x2x1
jax: 0.10.0
libtpu: 0.0.40
codegen_flags: <defaults>
</compile_context>

<pallas_src>
import numpy as np
import jax
import jax.numpy as jnp
from jax.experimental import pallas as pl
from jax.experimental.pallas import tpu as pltpu

SIZE = 32  # hidden size


def _vmem():
    return pl.BlockSpec(memory_space=pltpu.MemorySpace.VMEM)


# ----------------------------------------------------------------------------
# Pallas kernels
# ----------------------------------------------------------------------------
def _lstm_cell_kernel(xh_ref, c_ref, w_ref, b_ref, ho_ref, co_ref):
    # PyTorch LSTMCell, gate order (i, f, g, o); b = b_ih + b_hh (folded in glue).
    # xh = [x ; h] (n, 2S), w = [W_ih^T ; W_hh^T] (2S, 4S): a single fused matmul.
    S = c_ref.shape[-1]
    gates = jnp.dot(xh_ref[...], w_ref[...], preferred_element_type=jnp.float32) + b_ref[...]
    i = jax.nn.sigmoid(gates[:, 0 * S:1 * S])
    f = jax.nn.sigmoid(gates[:, 1 * S:2 * S])
    g = jnp.tanh(gates[:, 2 * S:3 * S])
    o = jax.nn.sigmoid(gates[:, 3 * S:4 * S])
    c_new = f * c_ref[...] + i * g
    co_ref[...] = c_new
    ho_ref[...] = o * jnp.tanh(c_new)


@jax.jit
def lstm_cell(x, h, c, w, b):
    """Batched LSTMCell over (n, S) rows; w is the fused (2S, 4S) weight."""
    n, S = h.shape
    xh = jnp.concatenate([x, h], axis=1)          # fused inside the same jit dispatch
    return pl.pallas_call(
        _lstm_cell_kernel,
        out_shape=(jax.ShapeDtypeStruct((n, S), jnp.float32),
                   jax.ShapeDtypeStruct((n, S), jnp.float32)),
        in_specs=[_vmem()] * 4,
        out_specs=(_vmem(), _vmem()),
    )(xh, c, w, b)


def _compose_kernel(xs_ref, wxf_ref, whf_ref, bf_ref, wxb_ref, whb_ref, bb_ref,
                    wl_ref, bl_ref, out_ref, gxf_scr, gxb_scr):
    # Fused bidirectional LSTM over the n children + Linear(2S, S) + Tanh.
    n, S = xs_ref.shape
    xs = xs_ref[...]
    # Hoist the input projections out of the recurrence: one (n,S)x(S,4S) matmul each.
    gxf_scr[...] = jnp.dot(xs, wxf_ref[...], preferred_element_type=jnp.float32) + bf_ref[...]
    gxb_scr[...] = jnp.dot(xs, wxb_ref[...], preferred_element_type=jnp.float32) + bb_ref[...]
    whf = whf_ref[...]
    whb = whb_ref[...]

    def lstm_step(pre, c):
        i = jax.nn.sigmoid(pre[:, 0 * S:1 * S])
        f = jax.nn.sigmoid(pre[:, 1 * S:2 * S])
        g = jnp.tanh(pre[:, 2 * S:3 * S])
        o = jax.nn.sigmoid(pre[:, 3 * S:4 * S])
        c_new = f * c + i * g
        return o * jnp.tanh(c_new), c_new

    def body(t, carry):
        hf, cf, hb, cb = carry                     # h/c live in registers (loop carry)
        pre_f = gxf_scr[pl.ds(t, 1), :] + jnp.dot(hf, whf, preferred_element_type=jnp.float32)
        hf, cf = lstm_step(pre_f, cf)
        pre_b = gxb_scr[pl.ds(n - 1 - t, 1), :] + jnp.dot(hb, whb, preferred_element_type=jnp.float32)
        hb, cb = lstm_step(pre_b, cb)
        return hf, cf, hb, cb

    z = jnp.zeros((1, S), jnp.float32)
    hf, cf, hb, cb = jax.lax.fori_loop(0, n, body, (z, z, z, z), unroll=True)
    # Linear(2S, S) on [h_fwd_last ; h_bwd_last] without an in-kernel lane concat.
    y = (jnp.dot(hf, wl_ref[0:S, :], preferred_element_type=jnp.float32)
         + jnp.dot(hb, wl_ref[S:2 * S, :], preferred_element_type=jnp.float32)
         + bl_ref[...])
    out_ref[...] = jnp.tanh(y)


@jax.jit
def compose_children(xs, wx_f, wh_f, b_f, wx_b, wh_b, b_b, wl, bl):
    n, S = xs.shape
    return pl.pallas_call(
        _compose_kernel,
        out_shape=jax.ShapeDtypeStruct((1, S), jnp.float32),
        in_specs=[_vmem()] * 9,
        out_specs=_vmem(),
        scratch_shapes=[pltpu.VMEM((n, 4 * S), jnp.float32),
                        pltpu.VMEM((n, 4 * S), jnp.float32)],
    )(xs, wx_f, wh_f, b_f, wx_b, wh_b, b_b, wl, bl)


def _nll_kernel(x_ref, wt_ref, b_ref, tgt_ref, loss_ref):
    # loss = -log_softmax(x @ W_out + b)[n, tgt_n]  (fused linear + logsoftmax + gather)
    logits = jnp.dot(x_ref[...], wt_ref[...], preferred_element_type=jnp.float32) + b_ref[...]
    m = jnp.max(logits, axis=1, keepdims=True)
    lse = m + jnp.log(jnp.sum(jnp.exp(logits - m), axis=1, keepdims=True))
    logp = logits - lse
    N, V = logits.shape
    cols = jax.lax.broadcasted_iota(jnp.int32, (N, V), 1)
    onehot = (cols == tgt_ref[...]).astype(jnp.float32)
    # (N,1) store: at N <= B = 2 a lane-dense relayout buys nothing, so keep the
    # sublane layout produced by the keepdims reduction.
    loss_ref[...] = -jnp.sum(logp * onehot, axis=1, keepdims=True)


@jax.jit
def nll_loss(x, wt, b, tgt):
    N = x.shape[0]
    out = pl.pallas_call(
        _nll_kernel,
        out_shape=jax.ShapeDtypeStruct((N, 1), jnp.float32),
        in_specs=[_vmem()] * 4,
        out_specs=_vmem(),
    )(x, wt, b, tgt)
    return out[:, 0]


def _attend_kernel(q_ref, hht_ref, hx_ref, mask_ref, alpha_ref, attn_ref):
    # Batched attention: q (B,1,S), hht = hist_h^T (B,S,H), hx = hist_x (B,H,S),
    # mask (B,1,H).  alpha = softmax_h(hist_h @ q); attn = sum_h alpha_h * hist_x_h.
    scores = jnp.einsum("bis,bsh->bih", q_ref[...], hht_ref[...],
                        preferred_element_type=jnp.float32)           # (B,1,H)
    mask = mask_ref[...]
    scores = jnp.where(mask > 0.0, scores, -1e30)
    m = jnp.max(scores, axis=2, keepdims=True)                         # (B,1,1)
    e = jnp.exp(scores - m) * mask
    denom = jnp.sum(e, axis=2, keepdims=True)
    alpha = e * pl.reciprocal(denom, approx=True)                      # EUP divide (free slot)
    alpha_ref[...] = alpha                                             # lane-dense (B,1,H)
    attn_ref[...] = jnp.einsum("bih,bhs->bis", alpha, hx_ref[...],
                               preferred_element_type=jnp.float32)     # (B,1,S)


@jax.jit
def attend_batched(q, hh_t, hx, mask):
    B, S = q.shape
    H = hx.shape[1]
    alpha, attn = pl.pallas_call(
        _attend_kernel,
        out_shape=(jax.ShapeDtypeStruct((B, 1, H), jnp.float32),
                   jax.ShapeDtypeStruct((B, 1, S), jnp.float32)),
        in_specs=[_vmem()] * 4,
        out_specs=(_vmem(), _vmem()),
    )(q.reshape(B, 1, S), hh_t, hx, mask.reshape(B, 1, H))
    return alpha.reshape(B, H), attn.reshape(B, S)


# ----------------------------------------------------------------------------
# Deterministic parameter initialization (synthetic — shapes from the module)
# ----------------------------------------------------------------------------
def _init_lstm(key, S):
    k1, k2 = jax.random.split(key)
    wx = 0.1 * jax.random.normal(k1, (S, 4 * S), jnp.float32)   # W_ih^T
    wh = 0.1 * jax.random.normal(k2, (S, 4 * S), jnp.float32)   # W_hh^T
    return dict(wx=wx, wh=wh, b=jnp.zeros((1, 4 * S), jnp.float32),
                w=jnp.concatenate([wx, wh], 0))                 # fused [W_ih ; W_hh]^T


def _init_linear(key, din, dout):
    return dict(wt=0.1 * jax.random.normal(key, (din, dout), jnp.float32),
                b=jnp.zeros((1, dout), jnp.float32))


def init_rnng_params(key, S, V):
    ks = jax.random.split(key, 8)
    return dict(
        stack_rnn=_init_lstm(ks[0], S),            # nn.LSTMCell(S, S)
        compose_f=_init_lstm(ks[1], S),            # bidirectional nn.LSTM, fwd dir
        compose_b=_init_lstm(ks[2], S),            # bidirectional nn.LSTM, bwd dir
        compose_lin=_init_linear(ks[3], 2 * S, S), # Linear(2S, S) + Tanh
        out=_init_linear(ks[6], S, V),             # Linear(S, V)
        # buffer_rnn / action / attn_linear / sentinel_* exist in the PyTorch module
        # but their outputs are never consumed in this forward configuration
        # (use_buffer=False, USE_RL_* = False), so no dead compute is materialized.
    )


# ----------------------------------------------------------------------------
# Host-side RNNG structure (dynamic trees stay in Python; math runs in Pallas)
# ----------------------------------------------------------------------------
class First:
    def __init__(self, x, hc, parent=None):
        self.x = x
        self.hc = hc
        self.parent = parent
        self.first = self
        self.nodes = []


class Node:
    def __init__(self, x, hc, first=None, orig_open=None, char=False):
        self.x = x
        self.hc = hc
        self.first = first
        self.orig_open = orig_open
        self.char = char
        if first is not None:
            first.nodes.append(self)


class StackLSTMSim:
    def __init__(self, size, itos, params, attention=False):
        self.size = size
        self.itos = itos
        self.p = params
        self.attention = attention

    def _cell_batched(self, x, h, c):
        p = self.p["stack_rnn"]
        return lstm_cell(x, h, c, p["w"], p["b"])

    def _compose(self, nodes):
        # fused bidirectional LSTM + Linear(2S,S) + Tanh over the children (1 launch)
        xs = jnp.concatenate([n.x for n in nodes], 0)                  # (n, S)
        pf, pb, pc = self.p["compose_f"], self.p["compose_b"], self.p["compose_lin"]
        return compose_children(xs, pf["wx"], pf["wh"], pf["b"],
                                pb["wx"], pb["wh"], pb["b"], pc["wt"], pc["b"])

    def init(self, batch_size, open_wv, encoding=None):
        zero = jnp.zeros((batch_size, self.size), jnp.float32)
        self.open_wv = open_wv.reshape(1, -1)
        self.tok = None
        self.batch_size = batch_size
        self.stack = []
        self.history = [[] for _ in range(batch_size)]
        if encoding is not None and self.attention:
            x_b = jnp.concatenate(list(encoding), 0)                   # (B, S)
            h0, c0 = zero, zero
            xs_store = list(encoding)
        elif encoding is not None:
            x_b = jnp.broadcast_to(self.open_wv, (batch_size, self.size))
            h0 = jnp.concatenate(list(encoding), 0)
            c0 = h0
            xs_store = [self.open_wv] * batch_size
        else:
            x_b = jnp.broadcast_to(self.open_wv, (batch_size, self.size))
            h0, c0 = zero, zero
            xs_store = [self.open_wv] * batch_size
        h_new, c_new = self._cell_batched(x_b, h0, c0)                 # ONE batched cell launch
        for i in range(batch_size):
            self.stack.append(First(xs_store[i], (h_new[i:i + 1], c_new[i:i + 1])))
        return h_new

    def step(self, xs, actions, tokens, treewards, attn_states=None, alphas=None, buffer_ixs=None):
        if alphas is None:
            alphas = []
        treewards.append([0.0] * self.batch_size)
        pending = []  # (kind, ix, x_row, previous_top)
        for ix in range(self.batch_size):
            top = self.stack[ix]
            kill_alpha = alphas != []
            a = actions[-1][ix]
            if a == 2 and top.first is not None and len(top.first.nodes) > 0:
                self.tok = None
                if (len(actions) > 1 and actions[-2][ix] == 2) or len(top.first.nodes) < 2:
                    treewards[-1][ix] = -1.0
                else:
                    child_types = [n.char for n in top.first.nodes]
                    if buffer_ixs[ix] != 0:
                        if all(child_types):
                            treewards[-1][ix] = 4.0 * len(top.first.nodes)
                        else:
                            treewards[-1][ix] = 10.0 * (len(child_types) - sum(child_types)) ** 0.5
                x = self._compose(top.first.nodes)
                pending.append(("reduce", ix, x, top))
            elif a == 1:
                if ix == 0:
                    self.tok = self.itos[int(tokens[ix])].replace("<init>", "#")
                x = xs[ix:ix + 1]
                pending.append(("shift", ix, x, top))
            elif a == 0:
                self.tok = None
                if len(actions) > 1 and actions[-2][ix] == 0:
                    treewards[-1][ix] = -1.0
                x = self.open_wv
                if self.attention:
                    x = attn_states[ix:ix + 1]
                    kill_alpha = False
                pending.append(("open", ix, x, top))
            elif top.first is not None:
                treewards[-1][ix] = -1.0
            if kill_alpha:
                alphas.pop()

        # ONE batched stack-LSTM cell launch for all elements that advanced this step.
        if pending:
            xb = jnp.concatenate([e[2] for e in pending], 0)
            hb = jnp.concatenate([e[3].hc[0] for e in pending], 0)
            cb = jnp.concatenate([e[3].hc[1] for e in pending], 0)
            hn, cn = self._cell_batched(xb, hb, cb)
            for k, (kind, ix, x, top) in enumerate(pending):
                hc = (hn[k:k + 1], cn[k:k + 1])
                if kind == "reduce":
                    self.stack[ix] = Node(x, hc, first=top.first.parent, orig_open=top.first)
                    self.history[ix].append(self.stack[ix])
                elif kind == "shift":
                    self.stack[ix] = Node(x, hc, first=top.first, char=True)
                else:
                    self.stack[ix] = First(x, hc, parent=top.first)
        return jnp.concatenate([node.hc[0] for node in self.stack], 0)


class RNNGSim:
    def __init__(self, size, embed, itos, params, decoder=False, attention=False, use_buffer=False):
        self.size = size
        self.embed = embed
        self.itos = itos
        self.p = params
        self.decoder = decoder
        self.use_buffer = use_buffer
        self.stack = StackLSTMSim(size, itos, params, attention)

    def attend(self):
        # all B softmax + weighted sums in ONE pallas_call
        alpha_all, attn = attend_batched(self.stack_states, self.hist_h_t,
                                         self.hist_x_pad, self.hist_mask)
        self.attention_states = attn
        for i, l in enumerate(self.hist_lens):
            self.alphas.append(alpha_all[i, :l])

    def __call__(self, data, history=None):
        T, B = data.shape
        self.targets = data
        data_np = np.asarray(data)                       # single up-front host transfer
        self.buffers = jnp.take(self.embed, data.reshape(-1), axis=0).reshape(T, B, -1)
        # dead buffer LSTM removed: its output is never consumed when use_buffer=False.
        self.ixs = [int(T - int((data_np[:, b] == 1).sum()) - 1) for b in range(B)]  # pad id == 1
        self.actions, self.tensor_actions, self.losses = [], [], []
        self.treewards, self.alphas = [], []
        if history is None:
            encoding = None
        else:
            encoding = [hist[-1].x for hist in history]
            hx_list = [jnp.concatenate([n.x for n in hist], 0) for hist in history]
            hh_list = [jnp.concatenate([n.hc[0] for n in hist], 0) for hist in history]
            self.hist_lens = [h.shape[0] for h in hx_list]
            hmax = max(self.hist_lens)
            pad = lambda a: jnp.pad(a, ((0, hmax - a.shape[0]), (0, 0)))
            self.hist_x_pad = jnp.stack([pad(a) for a in hx_list], 0)                    # (B,H,S)
            self.hist_h_t = jnp.transpose(jnp.stack([pad(a) for a in hh_list], 0), (0, 2, 1))  # (B,S,H)
            self.hist_mask = jnp.array(np.array(
                [[1.0] * l + [0.0] * (hmax - l) for l in self.hist_lens], np.float32))
        self.stack_states = self.stack.init(B, self.buffers[0, 0], encoding)
        self.attention_states = None
        done = [False] * B
        while not all(done):
            if self.decoder and self.stack.attention:
                self.attend()
            # With USE_RL_ENC / USE_RL_DEC both False, the +/-1e10 forced logits make
            # multinomial() deterministic: the chosen action depends only on the last
            # shifted token (stack.tok), and the action-linear's output feeds no loss
            # term and no returned value — so it is not computed and the per-step
            # device->host sync is gone entirely.
            targets = [int(data_np[self.ixs[b], b]) for b in range(B)]
            if self.stack.tok == "(":
                forced = 0
            elif self.stack.tok == ")":
                forced = 2
            else:
                forced = 1
            actions = []
            for ix in range(B):
                done[ix] = self.stack.stack[ix].first is None
                actions.append(forced)
            self.actions.append(list(actions))
            self.tensor_actions.append(list(actions))
            self.step(self.tensor_actions[-1], targets)
        return self.stack.history, self.actions, (self.treewards, self.alphas), self.losses

    def step(self, actions, targets):
        B = len(actions)
        for b in range(B):                      # actions.masked_fill_(ixs.eq(0), 2)
            if self.ixs[b] == 0:
                actions[b] = 2
        shifted = [b for b in range(B) if actions[b] == 1]
        if shifted:
            x = self.stack_states[jnp.array(shifted)]
            tgt = jnp.array([targets[b] for b in shifted], jnp.int32).reshape(-1, 1)
            po = self.p["out"]
            self.losses.append(nll_loss(x, po["wt"], po["b"], tgt))        # (n_shift,)
        else:
            self.losses.append(0)               # legacy "no shifts this step" path
        buffer_tops = self.buffers[jnp.array(self.ixs), jnp.arange(B)]      # one gather
        self.stack_states = self.stack.step(buffer_tops, self.tensor_actions, targets,
                                            self.treewards, self.attention_states,
                                            self.alphas, self.ixs)
        for b in range(B):
            if actions[b] == 1:
                self.ixs[b] -= 1


class T2TSim:
    def __init__(self, size, itos, key):
        V = len(itos)
        k_embed, k_enc, k_dec = jax.random.split(key, 3)
        self.embed = 0.1 * jax.random.normal(k_embed, (V, size), jnp.float32)  # shared nn.Embedding
        self.encoder = RNNGSim(size, self.embed, itos, init_rnng_params(k_enc, size, V))
        self.decoder = RNNGSim(size, self.embed, itos, init_rnng_params(k_dec, size, V),
                               decoder=True, attention=True, use_buffer=False)
        self.itos = itos

    def forward(self, src, trg):
        encoding, enc_actions, enc_treewards, enc_losses = self.encoder(src)
        best_loss = 100000
        for _ in range(1):
            _, this_dec_actions, this_dec_treewards, this_losses = self.decoder(trg, encoding)
            n_nonzero = sum(1 for l in this_losses if not (isinstance(l, int) and l == 0))
            this_loss = float(jnp.mean(sum(this_losses))) / n_nonzero
            if this_loss < best_loss:
                dec_actions, dec_treewards = this_dec_actions, this_dec_treewards
                dec_losses = this_losses
        enc_treewards, _ = enc_treewards
        dec_treewards, alphas = dec_treewards
        if len(alphas) == 0 or alphas[0].shape[0] < 2:
            coverage = -100
        else:
            # TODO(synk): original coverage term relies on legacy (PyTorch<=0.2 keepdim=True)
            # reduction shapes; modern-semantics equivalent below (unexercised with paren-free trg).
            A = jnp.stack(alphas, 0)
            max_0 = jnp.mean((jnp.max(A[:, :-1], axis=0) - 1) ** 2)
            max_1 = jnp.mean((jnp.max(A[:, :-1], axis=1) - 1) ** 2)
            s = jnp.sum(A, axis=0)
            coverage = (-jnp.mean(jnp.concatenate([(1 - s[:-1]) ** 2, s[-1:] ** 2], 0))
                        - max_0 - max_1)
        loss = sum(enc_losses)
        if not (isinstance(loss, int) and loss == 0):
            loss = loss.sum()
        loss = loss + sum(dec_losses).sum()
        loss = loss * 10
        return loss - coverage * 10, sum(dec_losses).sum(), trg.shape[0] - 2


# ----------------------------------------------------------------------------
# Main
# ----------------------------------------------------------------------------
if __name__ == "__main__":
    # quick numerical sanity check of the fused-cell Pallas kernel vs. pure JAX
    kc = jax.random.PRNGKey(0)
    kx, kh, kw1, kw2 = jax.random.split(kc, 4)
    x0 = jax.random.normal(kx, (2, SIZE), jnp.float32)
    h0 = jax.random.normal(kh, (2, SIZE), jnp.float32)
    c0 = jnp.zeros((2, SIZE), jnp.float32)
    wx0 = 0.1 * jax.random.normal(kw1, (SIZE, 4 * SIZE), jnp.float32)
    wh0 = 0.1 * jax.random.normal(kw2, (SIZE, 4 * SIZE), jnp.float32)
    w0 = jnp.concatenate([wx0, wh0], 0)
    b0 = jnp.zeros((1, 4 * SIZE), jnp.float32)
    h1, c1 = lstm_cell(x0, h0, c0, w0, b0)
    g = x0 @ wx0 + h0 @ wh0 + b0
    i_, f_, g_, o_ = (jax.nn.sigmoid(g[:, :SIZE]), jax.nn.sigmoid(g[:, SIZE:2 * SIZE]),
                      jnp.tanh(g[:, 2 * SIZE:3 * SIZE]), jax.nn.sigmoid(g[:, 3 * SIZE:]))
    c_ref = f_ * c0 + i_ * g_
    np.testing.assert_allclose(np.asarray(c1), np.asarray(c_ref), rtol=2e-4, atol=2e-4)
    np.testing.assert_allclose(np.asarray(h1), np.asarray(o_ * jnp.tanh(c_ref)),
                               rtol=2e-4, atol=2e-4)

    # vocab: pad id must be 1 (data.eq(1) counts pads); '(' / ')' drive tree actions
    itos = ["<init>", "<pad>", "(", ")", "a", "b", "c", "d", "e", "f"]
    stoi = {s: i for i, s in enumerate(itos)}
    B = 2

    # src (forward order): "<init> e d ) c b ( a"  — the RNNG consumes it back-to-front,
    # producing one nested constituent plus the root (2 history entries per element).
    src_col = [stoi[t] for t in ["<init>", "e", "d", ")", "c", "b", "(", "a"]]
    # trg: paren-free => the decoder builds a flat tree (coverage takes the -100 branch).
    trg_col = [stoi[t] for t in ["<init>", "f", "a", "b", "c", "d"]]
    src = jnp.array(np.stack([src_col] * B, axis=1), jnp.int32)   # (8, 2)
    trg = jnp.array(np.stack([trg_col] * B, axis=1), jnp.int32)   # (6, 2)

    model = T2TSim(SIZE, itos, jax.random.PRNGKey(0))
    total_loss, dec_loss_sum, n_tok = model.forward(src, trg)
    jax.block_until_ready((total_loss, dec_loss_sum))
    assert np.isfinite(float(total_loss)) and np.isfinite(float(dec_loss_sum))
    assert n_tok == trg.shape[0] - 2
    print("KERNEL_OK")
</pallas_src>

<mosaic_0001>
module attributes {stable_mosaic.version = 11 : i64} {
  func.func @_lstm_cell_kernel(%arg0: memref<2x64xf32, #tpu.memory_space<vmem>>, %arg1: memref<2x32xf32, #tpu.memory_space<vmem>>, %arg2: memref<64x128xf32, #tpu.memory_space<vmem>>, %arg3: memref<1x128xf32, #tpu.memory_space<vmem>>, %arg4: memref<2x32xf32, #tpu.memory_space<vmem>>, %arg5: memref<2x32xf32, #tpu.memory_space<vmem>>) attributes {dimension_semantics = [], scalar_prefetch = 0 : i64, scratch_operands = 0 : i64, tpu.core_type = #tpu.core_type<tc>} {
    %c0 = arith.constant 0 : index
    %c0_0 = arith.constant 0 : index
    %0 = vector.load %arg0[%c0, %c0_0] : memref<2x64xf32, #tpu.memory_space<vmem>>, vector<2x64xf32>
    %c0_1 = arith.constant 0 : index
    %c0_2 = arith.constant 0 : index
    %1 = vector.load %arg2[%c0_1, %c0_2] : memref<64x128xf32, #tpu.memory_space<vmem>>, vector<64x128xf32>
    %cst = arith.constant dense<0.000000e+00> : vector<2x128xf32>
    %2 = tpu.matmul %0, %1, %cst {dimension_numbers = #tpu.dot_dimension_numbers<[1], [0], [0], [1], [0, 0, 1, 1], [], []>} : vector<2x64xf32>, vector<64x128xf32>, vector<2x128xf32> -> vector<2x128xf32>
    %c0_3 = arith.constant 0 : index
    %c0_4 = arith.constant 0 : index
    %3 = vector.load %arg3[%c0_3, %c0_4] : memref<1x128xf32, #tpu.memory_space<vmem>>, vector<1x128xf32>
    %4 = vector.broadcast %3 : vector<1x128xf32> to vector<2x128xf32>
    %5 = arith.addf %2, %4 : vector<2x128xf32>
    %6 = vector.extract_strided_slice %5 {offsets = [0, 0], sizes = [2, 32], strides = [1, 1]} : vector<2x128xf32> to vector<2x32xf32>
    %7 = arith.negf %6 : vector<2x32xf32>
    %8 = math.exp %7 : vector<2x32xf32>
    %cst_5 = arith.constant 1.000000e+00 : f32
    %9 = vector.broadcast %cst_5 : f32 to vector<2x32xf32>
    %10 = arith.addf %9, %8 : vector<2x32xf32>
    %11 = arith.divf %9, %10 : vector<2x32xf32>
    %12 = vector.extract_strided_slice %5 {offsets = [0, 32], sizes = [2, 32], strides = [1, 1]} : vector<2x128xf32> to vector<2x32xf32>
    %13 = arith.negf %12 : vector<2x32xf32>
    %14 = math.exp %13 : vector<2x32xf32>
    %cst_6 = arith.constant 1.000000e+00 : f32
    %15 = vector.broadcast %cst_6 : f32 to vector<2x32xf32>
    %16 = arith.addf %15, %14 : vector<2x32xf32>
    %17 = arith.divf %15, %16 : vector<2x32xf32>
    %18 = vector.extract_strided_slice %5 {offsets = [0, 64], sizes = [2, 32], strides = [1, 1]} : vector<2x128xf32> to vector<2x32xf32>
    %19 = math.tanh %18 : vector<2x32xf32>
    %20 = vector.extract_strided_slice %5 {offsets = [0, 96], sizes = [2, 32], strides = [1, 1]} : vector<2x128xf32> to vector<2x32xf32>
    %21 = arith.negf %20 : vector<2x32xf32>
    %22 = math.exp %21 : vector<2x32xf32>
    %cst_7 = arith.constant 1.000000e+00 : f32
    %23 = vector.broadcast %cst_7 : f32 to vector<2x32xf32>
    %24 = arith.addf %23, %22 : vector<2x32xf32>
    %25 = arith.divf %23, %24 : vector<2x32xf32>
    %c0_8 = arith.constant 0 : index
    %c0_9 = arith.constant 0 : index
    %26 = vector.load %arg1[%c0_8, %c0_9] : memref<2x32xf32, #tpu.memory_space<vmem>>, vector<2x32xf32>
    %27 = arith.mulf %17, %26 : vector<2x32xf32>
    %28 = arith.mulf %11, %19 : vector<2x32xf32>
    %29 = arith.addf %27, %28 : vector<2x32xf32>
    %c0_10 = arith.constant 0 : index
    %c0_11 = arith.constant 0 : index
    %30 = vector.load %arg5[%c0_10, %c0_11] : memref<2x32xf32, #tpu.memory_space<vmem>>, vector<2x32xf32>
    tpu.vector_store %arg5[%c0_10, %c0_11], %29 {strides = array<i32>} : memref<2x32xf32, #tpu.memory_space<vmem>>, vector<2x32xf32>,
    %31 = math.tanh %29 : vector<2x32xf32>
    %32 = arith.mulf %25, %31 : vector<2x32xf32>
    %c0_12 = arith.constant 0 : index
    %c0_13 = arith.constant 0 : index
    %33 = vector.load %arg4[%c0_12, %c0_13] : memref<2x32xf32, #tpu.memory_space<vmem>>, vector<2x32xf32>
    tpu.vector_store %arg4[%c0_12, %c0_13], %32 {strides = array<i32>} : memref<2x32xf32, #tpu.memory_space<vmem>>, vector<2x32xf32>,
    return
  }
}

</mosaic_0001>

<bundles_post_ra>
// kernel: lstm_cell.1
= control target key start
LH: loop header
LB: loop body
LE: loop exit
PB: predicated region body
PF: predicated region fallthrough
CT: control target
= control target key end

     0   :  { %11 = vsyncpa [#allocation3], 0  ;;  %s372_s0 = inlined_call_operand.vmem [shape: f32[2,64], index: 0, kind: input, shape index: {}]   ;;  %s373_s1 = inlined_call_operand.vmem [shape: f32[2,32], index: 1, kind: input, shape index: {}]   ;;  %s374_s2 = inlined_call_operand.hbm [shape: f32[64,128], index: 2, kind: input, shape index: {}]   ;;  %s375_s3 = inlined_call_operand.vmem [shape: f32[1,128], index: 3, kind: input, shape index: {}]   ;;  %s376_s4 = inlined_call_operand.hbm [shape: f32[2,32], index: 4, kind: output, shape index: {0}]   ;;  %s377_s5 = inlined_call_operand.hbm [shape: f32[2,32], index: 5, kind: output, shape index: {1}]  }
   0x1   :  { %12 = vsyncpa [#allocation4], 0 }
   0x2   :  { %13 = vsyncpa [#allocation7], 0  ;;  %s309_s18 = smov [#allocation2]  }
   0x3   :  { %s23_s19 = sshll.u32 %s309_s18, 4  ;;  %s24_s19 = int_to_ptr.vmem [resolvable:$true] %s23_s19 }
   0x4   :  { %s251_s20 = scalar_lea.vmem %s24_s19, 1024  ;;  %p256_p1 = scmp.lt.s32.totalorder %s24_s19, %s24_s19 }
   0x5   :  { %p252_p0 = scmp.ne.s32.totalorder %s24_s19, %s251_s20  ;;  %p257_p2 = scmp.lt.s32.totalorder %s251_s20, %s251_s20 }
   0x7   :  { %p258_p3 = por %p257_p2, %p256_p1 }
   0x9   :  { %p259_p4 = pnand %p258_p3, %p252_p0 }
   0xb   :  { %262 = shalt.err (!%p259_p4)
}
   0xc   :  { %s310_s21 = smov 128   ;;  %s311_s22 = smov 8  }
   0xd   :  { %29 = dma.hbm_to_vmem [thread:$0]  %s374_s2, 1024, %s24_s19, [#allocation3], %s310_s21, %s310_s21, %s311_s22  }
   0xe   :  { %303 = dma.done.wait [#allocation3], 1024  }
   0xf   :  { %304 = vsyncadd [#allocation3], 4294966272  ;;  %v312_v0 = vmov 0.0   ;;  %vm313_vm0 = vmmov 0   ;;  %v43_v1 = vld [vmem:[#allocation2 + $0x38] sm:$0xff]  ;;  %v42_v2 = vld [vmem:[#allocation2 + $0x30] sm:$0xff] }
  0x10   :  { %206 = vmatprep.subr.mxu0 %v312_v0  ;;  %222 = vmatprep.mubr.msk.f32.mxu0 %vm313_vm0, %v312_v0  ;;  %v41_v3 = vld [vmem:[#allocation2 + $0x28] sm:$0xff]  ;;  %v40_v4 = vld [vmem:[#allocation2 + $0x20] sm:$0xff]  ;;  %v39_v5 = vld [vmem:[#allocation2 + $0x18] sm:$0xff]  ;;  %vm51_vm1 = vcmask 523264   ;;  %s314_s28 = smov 64   ;;  %vm152_vm2 = vcmask 254976  }
  0x11   :  { %207 = vmatpush3.msra.mxu0 %v43_v1  ;;  %v38_v6 = vld [vmem:[#allocation2 + $0x10] sm:$0xff]  ;;  %v37_v7 = vld [vmem:[#allocation2 + $0x8] sm:$0xff]  ;;  %v36_v8 = vld [vmem:[#allocation2] sm:$0xff] }
  0x12   :  { %208 = vmatprep.subr.mxu0 %v312_v0  ;;  %v35_v9 = vld [vmem:[%s372_s0] sm:$0x3]  ;;  %s315_s0 = smov 32  }
  0x13   :  { %209 = vmatpush3.msra.mxu0 %v42_v2  ;;  %v194_v10 = vld [vmem:[%s375_s3] ss:$0 sm:$0xff]  ;;  %s316_s3 = smov 96  }
  0x14   :  { %210 = vmatprep.subr.mxu0 %v312_v0  ;;  %v132_v15 = vld [vmem:[%s373_s1] sm:$0x3]  ;;  %s317_s1 = smov [#allocation6]  }
  0x15   :  { %211 = vmatpush3.msra.mxu0 %v41_v3  ;;  %s181_s6 = sshll.u32 %s317_s1, 4  ;;  %s182_s6 = int_to_ptr.vmem [resolvable:$true] %s181_s6 }
  0x16   :  { %212 = vmatprep.subr.mxu0 %v312_v0  ;;  %s263_s7 = scalar_lea.vmem %s182_s6, 32  ;;  %p268_p6 = scmp.lt.s32.totalorder %s182_s6, %s182_s6 }
  0x17   :  { %213 = vmatpush3.msra.mxu0 %v40_v4  ;;  %p264_p5 = scmp.ne.s32.totalorder %s182_s6, %s263_s7  ;;  %p269_p7 = scmp.lt.s32.totalorder %s263_s7, %s263_s7 }
  0x18   :  { %214 = vmatprep.subr.mxu0 %v312_v0 }
  0x19   :  { %215 = vmatpush3.msra.mxu0 %v39_v5  ;;  %p270_p8 = por %p269_p7, %p268_p6 }
  0x1a   :  { %216 = vmatprep.subr.mxu0 %v312_v0 }
  0x1b   :  { %217 = vmatpush3.msra.mxu0 %v38_v6  ;;  %p271_p9 = pnand %p270_p8, %p264_p5 }
  0x1c   :  { %218 = vmatprep.subr.mxu0 %v312_v0 }
  0x1d   :  { %219 = vmatpush3.msra.mxu0 %v37_v7 }
  0x1e   :  { %220 = vmatprep.subr.mxu0 %v312_v0 }
  0x1f   :  { %221 = vmatpush3.msra.mxu0 %v36_v8 }
  0x20   :  { %223 = vmatmul.mubr.msk.f32.vlgmr.msra.gmra.mxu0 %vm51_vm1, %v35_v9 }
  0xe0   :  { %v121_v11 = vpop.f32.mrf.mxu0 }
  0xe1   :  { %v122_v12 = vadd.f32 %v194_v10, %v121_v11 }
  0xe2   :  { %v224_v13 = vpop.f32.mrf.mxu0 }
  0xe3   :  { %235 = vtanh.f32 %v122_v12  ;;  %v196_v16 = vmul.f32 -1.442695, %v122_v12 }
  0xe5   :  { %237 = vpow2.f32 %v196_v16 }
  0xf0   :  { %v236_v14 = vpop.eup %235 }
  0xf1   :  { %139 = vrot.lane.b32.xlu0 %v236_v14, %s314_s28 }
  0xf2   :  { %v238_v17 = vpop.eup %237 }
  0xf3   :  { %v128_v18 = vadd.f32 1.0, %v238_v17 }
  0xf5   :  { %134 = vrot.lane.b32.xlu0 %v132_v15, %s315_s0  ;;  %239 = vrcp.f32 %v128_v18 }
 0x102   :  { %v240_v19 = vpop.eup %239 }
 0x163   :  { %v140_v20 = vpop.permute.xlu0 %139 }
 0x164   :  { %v142_v21 = vmul.f32 %v240_v19, %v140_v20 }
 0x166   :  { %144 = vrot.lane.b32.xlu1 %v142_v21, %s315_s0 }
 0x167   :  { %v135_v22 = vpop.permute.xlu0 %134 }
 0x168   :  { %v137_v23 = vmul.f32 %v240_v19, %v135_v22 }
 0x1d8   :  { %v145_v24 = vpop.permute.xlu1 %144 }
 0x1d9   :  { %v147_v25 = vadd.f32 %v145_v24, %v137_v23 }
 0x1db   :  { %241 = vtanh.f32 %v147_v25  ;;  %149 = vrot.lane.b32.xlu0 %v147_v25, %s316_s3 }
 0x1e8   :  { %v242_v26 = vpop.eup %241 }
 0x1e9   :  { %156 = vrot.lane.b32.xlu1 %v242_v26, %s314_s28 }
 0x24d   :  { %v150_v27 = vpop.permute.xlu0 %149 }
 0x24e   :  { %153 = vst.msk [vmem:[#allocation6] sm:$0x3] %vm152_vm2, %v150_v27 }
 0x24f   :  { %274 = shalt.err (!%p271_p9)
}
 0x250   :  { %184 = dma.vmem_to_hbm [thread:$0]  %s182_s6, 32, %s377_s5, [#allocation7]  }
 0x251   :  { %s318_s10 = smov [#allocation5]  }
 0x252   :  { %s171_s11 = sshll.u32 %s318_s10, 4  ;;  %s172_s11 = int_to_ptr.vmem [resolvable:$true] %s171_s11 }
 0x253   :  { %s283_s12 = scalar_lea.vmem %s172_s11, 32  ;;  %p288_p11 = scmp.lt.s32.totalorder %s172_s11, %s172_s11 }
 0x254   :  { %p284_p10 = scmp.ne.s32.totalorder %s172_s11, %s283_s12  ;;  %p289_p12 = scmp.lt.s32.totalorder %s283_s12, %s283_s12 }
 0x256   :  { %p290_p13 = por %p289_p12, %p288_p11 }
 0x258   :  { %p291_p0 = pnand %p290_p13, %p284_p10 }
 0x25b   :  { %v157_v28 = vpop.permute.xlu1 %156 }
 0x25c   :  { %v159_v29 = vmul.f32 %v240_v19, %v157_v28 }
 0x25e   :  { %161 = vrot.lane.b32.xlu1 %v159_v29, %s315_s0 }
 0x2d0   :  { %v162_v30 = vpop.permute.xlu1 %161 }
 0x2d1   :  { %164 = vst.msk [vmem:[#allocation5] sm:$0x3] %vm152_vm2, %v162_v30 }
 0x2d2   :  { %294 = shalt.err (!%p291_p0)
}
 0x2d3   :  { %174 = dma.vmem_to_hbm [thread:$0]  %s172_s11, 32, %s376_s4, [#allocation4]  }
 0x2d4   :  { %305 = dma.done.wait [#allocation4], 32  }
 0x2d5   :  { %306 = vsyncadd [#allocation4], 4294967264 }
 0x2d6   :  { %307 = dma.done.wait [#allocation7], 32  }
 0x2d7   :  { %308 = vsyncadd [#allocation7], 4294967264 }
 0x2d8   :  { %191 = vsyncpa [#allocation3], 1 }
 0x2d9   :  { %192 = vsyncpa [#allocation4], 1 }
 0x2da   :  { %193 = vsyncpa [#allocation7], 1 }

</bundles_post_ra>
